<compile_context>
chip_gen: v5e
topology: v5e:2x2
jax: 0.10.0
libtpu: 0.0.40
codegen_flags: <defaults>
</compile_context>

<pallas_src>
import numpy as np
import jax
import jax.numpy as jnp
from jax.experimental import pallas as pl
from jax.experimental.pallas import tpu as pltpu

IN_FEATURES = 24
LANE = 128


def _round_up(n, m):
    return ((n + m - 1) // m) * m


# ----------------------------------------------------------------------------
# Kernel: one (TB, 24) batch tile per grid step, all four layers fused.
# ----------------------------------------------------------------------------
def _custom_rnn_kernel(x_ref, w1_ref, w2_ref, w3_ref, w4_ref, b_ref, o_ref):
    x = x_ref[...]                                   # (TB, 24) f32, narrow
    b = b_ref[...]                                   # (8, H)   f32, rows 0..3 used

    # lin_1 + ReLU   (bn_1 folded into w2/b2)
    h = jnp.dot(x.astype(jnp.bfloat16), w1_ref[...],
                preferred_element_type=jnp.float32)  # (TB, H)
    h = jnp.maximum(h + b[0:1, :], 0.0)

    # lin_2 + ReLU   (bn_2 folded into w3/b3)
    h = jnp.dot(h.astype(jnp.bfloat16), w2_ref[...],
                preferred_element_type=jnp.float32)
    h = jnp.maximum(h + b[1:2, :], 0.0)

    # lin_3 + ReLU   (bn_3 folded into w4/b4)
    h = jnp.dot(h.astype(jnp.bfloat16), w3_ref[...],
                preferred_element_type=jnp.float32)
    h = jnp.maximum(h + b[2:3, :], 0.0)

    # lin_4 + ReLU
    h = jnp.dot(h.astype(jnp.bfloat16), w4_ref[...],
                preferred_element_type=jnp.float32)  # (TB, 24)
    h = jnp.maximum(h + b[3:4, :h.shape[1]], 0.0)

    o_ref[...] = jnp.minimum(h, x)                   # element-wise min with f32 x


# ----------------------------------------------------------------------------
# Wrapper
# ----------------------------------------------------------------------------
def custom_rnn_forward(x, params, *, tile_b=1024):
    """x: (B, 24) float32 -> (B, 24) float32 (eval-mode CustomRNN forward)."""
    B, F = x.shape
    H = params["hidden_pad"]
    w1, w2, w3, w4, b = (params["w1"], params["w2"], params["w3"],
                         params["w4"], params["b"])

    # Pad the batch only to the f32 sublane multiple (8); the ragged last tile
    # is handled by a cdiv grid instead of full-tile padding.
    Bp = _round_up(B, 8)
    TB = min(_round_up(tile_b, 8), Bp)
    # Guarantee >= 2 grid steps when the batch allows it so the "parallel"
    # batch axis can actually shard across v7x's two TensorCores.
    if Bp >= 16:
        TB = min(TB, _round_up(pl.cdiv(Bp, 2), 8))
    grid = (pl.cdiv(Bp, TB),)

    xp = x.astype(jnp.float32)
    if Bp != B:
        xp = jnp.pad(xp, ((0, Bp - B), (0, 0)))

    # Streamed narrow activation tiles (24 lanes, f32); weights/bias resident.
    act_spec = pl.BlockSpec((TB, F), lambda i: (i, 0))

    def resident(a):
        return pl.BlockSpec(a.shape, lambda i: (0, 0))

    flops = 2 * Bp * (F * H + H * H + H * H + H * F) + 8 * Bp * H
    bytes_accessed = (2 * Bp * F * 4                              # x in + out
                      + (w1.size + w2.size + w3.size + w4.size) * 2
                      + b.size * 4)

    out = pl.pallas_call(
        _custom_rnn_kernel,
        out_shape=jax.ShapeDtypeStruct((Bp, F), jnp.float32),
        grid=grid,
        in_specs=[act_spec, resident(w1), resident(w2), resident(w3),
                  resident(w4), resident(b)],
        out_specs=act_spec,
        compiler_params=pltpu.CompilerParams(
            dimension_semantics=("parallel",)),
        cost_estimate=pl.CostEstimate(flops=int(flops), transcendentals=0,
                                      bytes_accessed=int(bytes_accessed)),
    )(xp, w1, w2, w3, w4, b)

    return out[:B] if Bp != B else out


# ----------------------------------------------------------------------------
# Parameter construction (torch-like Linear init, eval-mode BN folded, padded)
# ----------------------------------------------------------------------------
def init_params(key, size1, size2, size3, eps=1e-5):
    """Returns (kernel_params, raw).

    kernel_params: BN-folded bf16 weights stored (in, out), lane-padded only
                   where they touch the hidden dims:
                     w1: (24, H), w2/w3: (H, H), w4: (H, 24), H = 128-multiple
                   plus a stacked f32 bias block of shape (8, H).
    raw:           the original unpadded f32 (W, b) list for an f32 reference.
    """
    dims = [(IN_FEATURES, size1), (size1, size2),
            (size2, size3), (size3, IN_FEATURES)]
    keys = jax.random.split(key, 2 * len(dims))
    Ws, bs = [], []
    for i, (fi, fo) in enumerate(dims):
        bound = 1.0 / float(np.sqrt(fi))
        Ws.append(jax.random.uniform(keys[2 * i], (fi, fo),
                                     minval=-bound, maxval=bound,
                                     dtype=jnp.float32))
        bs.append(jax.random.uniform(keys[2 * i + 1], (1, fo),
                                     minval=-bound, maxval=bound,
                                     dtype=jnp.float32))
    raw = (list(Ws), list(bs))

    # Eval-mode BatchNorm1d with default state (gamma=1, beta=0, mean=0, var=1):
    #   y = s*x + t  with  s = 1/sqrt(1+eps), t = 0.  Applied after ReLU of
    #   layers 1..3; fold it into the following Linear.
    scales = [jnp.full((1, d), 1.0 / np.sqrt(1.0 + eps), jnp.float32)
              for d in (size1, size2, size3)]
    shifts = [jnp.zeros((1, d), jnp.float32) for d in (size1, size2, size3)]
    Wf, bf = list(Ws), list(bs)
    for k in range(3):
        W, b = Ws[k + 1], bs[k + 1]
        Wf[k + 1] = scales[k].reshape(-1, 1) * W
        bf[k + 1] = shifts[k] @ W + b

    H = _round_up(max(size1, size2, size3), LANE)
    F = IN_FEATURES

    def pad_to(a, rows, cols):
        return jnp.pad(a, ((0, rows - a.shape[0]), (0, cols - a.shape[1])))

    params = {"hidden_pad": H}
    params["w1"] = pad_to(Wf[0], F, H).astype(jnp.bfloat16)   # (24, H)
    params["w2"] = pad_to(Wf[1], H, H).astype(jnp.bfloat16)   # (H, H)
    params["w3"] = pad_to(Wf[2], H, H).astype(jnp.bfloat16)   # (H, H)
    params["w4"] = pad_to(Wf[3], H, F).astype(jnp.bfloat16)   # (H, 24)

    bstack = jnp.zeros((8, H), jnp.float32)
    for i, bb in enumerate(bf):
        bstack = bstack.at[i, :bb.shape[1]].set(bb[0])
    params["b"] = bstack
    return params, raw


# ----------------------------------------------------------------------------
# References
# ----------------------------------------------------------------------------
def reference_forward_same_path(x, params):
    """Plain-JAX reference following the exact bf16/padded path of the kernel."""
    b = params["b"]
    h = x.astype(jnp.float32)
    for i, w in enumerate([params["w1"], params["w2"],
                           params["w3"], params["w4"]]):
        h = jnp.dot(h.astype(jnp.bfloat16), w,
                    preferred_element_type=jnp.float32)
        h = jnp.maximum(h + b[i:i + 1, :h.shape[1]], 0.0)
    return jnp.minimum(h, x)


def reference_forward_f32(x, raw, eps=1e-5):
    """Original-module semantics (eval mode), full f32, unpadded."""
    Ws, bs = raw
    s = 1.0 / np.sqrt(1.0 + eps)                 # eval-mode BN with defaults
    h = x
    for k in range(3):
        h = jnp.maximum(h @ Ws[k] + bs[k], 0.0) * s
    h = jnp.maximum(h @ Ws[3] + bs[3], 0.0)
    return jnp.minimum(h, x)


if __name__ == "__main__":
    size1, size2, size3 = 32, 64, 32

    key = jax.random.PRNGKey(0)
    k_x, k_p, k_x2 = jax.random.split(key, 3)
    params, raw = init_params(k_p, size1, size2, size3)

    # Small smoke test (single grid step).
    B = 8
    x = jax.random.normal(k_x, (B, IN_FEATURES), dtype=jnp.float32)
    out = jax.block_until_ready(custom_rnn_forward(x, params))
    assert out.shape == (B, IN_FEATURES)
    assert jnp.allclose(out, reference_forward_same_path(x, params),
                        atol=1e-3, rtol=1e-3), "mismatch vs bf16-path reference"
    assert jnp.allclose(out, reference_forward_f32(x, raw),
                        atol=5e-2, rtol=5e-2), "mismatch vs f32 reference"

    # Multi-step grid with a ragged last tile (exercises cdiv grid + >=2 steps).
    B2 = 300
    x2 = jax.random.normal(k_x2, (B2, IN_FEATURES), dtype=jnp.float32)
    out2 = jax.block_until_ready(custom_rnn_forward(x2, params, tile_b=128))
    assert out2.shape == (B2, IN_FEATURES)
    assert jnp.allclose(out2, reference_forward_same_path(x2, params),
                        atol=1e-3, rtol=1e-3), "mismatch on ragged-tile batch"

    print("KERNEL_OK")
</pallas_src>

<mosaic_0001>
module attributes {stable_mosaic.version = 11 : i64} {
  func.func @_custom_rnn_kernel(%arg0: i32, %arg1: memref<8x24xf32, #tpu.memory_space<vmem>>, %arg2: memref<24x128xbf16, #tpu.memory_space<vmem>>, %arg3: memref<128x128xbf16, #tpu.memory_space<vmem>>, %arg4: memref<128x128xbf16, #tpu.memory_space<vmem>>, %arg5: memref<128x24xbf16, #tpu.memory_space<vmem>>, %arg6: memref<8x128xf32, #tpu.memory_space<vmem>>, %arg7: memref<8x24xf32, #tpu.memory_space<vmem>>) attributes {dimension_semantics = [#tpu.dimension_semantics<parallel>], iteration_bounds = array<i64: 1>, scalar_prefetch = 0 : i64, scratch_operands = 0 : i64, tpu.core_type = #tpu.core_type<tc>, window_params = [{transform_indices = @transform_0, window_bounds = array<i64: 8, 24>}, {pipeline_mode = #tpu.pipeline_mode<synchronous>, transform_indices = @transform_1, window_bounds = array<i64: 24, 128>}, {pipeline_mode = #tpu.pipeline_mode<synchronous>, transform_indices = @transform_2, window_bounds = array<i64: 128, 128>}, {pipeline_mode = #tpu.pipeline_mode<synchronous>, transform_indices = @transform_3, window_bounds = array<i64: 128, 128>}, {pipeline_mode = #tpu.pipeline_mode<synchronous>, transform_indices = @transform_4, window_bounds = array<i64: 128, 24>}, {pipeline_mode = #tpu.pipeline_mode<synchronous>, transform_indices = @transform_5, window_bounds = array<i64: 8, 128>}, {transform_indices = @transform_6, window_bounds = array<i64: 8, 24>}]} {
    %c0 = arith.constant 0 : index
    %c0_0 = arith.constant 0 : index
    %0 = vector.load %arg1[%c0, %c0_0] : memref<8x24xf32, #tpu.memory_space<vmem>>, vector<8x24xf32>
    %c0_1 = arith.constant 0 : index
    %c0_2 = arith.constant 0 : index
    %1 = vector.load %arg6[%c0_1, %c0_2] : memref<8x128xf32, #tpu.memory_space<vmem>>, vector<8x128xf32>
    %2 = arith.truncf %0 : vector<8x24xf32> to vector<8x24xbf16>
    %c0_3 = arith.constant 0 : index
    %c0_4 = arith.constant 0 : index
    %3 = vector.load %arg2[%c0_3, %c0_4] : memref<24x128xbf16, #tpu.memory_space<vmem>>, vector<24x128xbf16>
    %cst = arith.constant dense<0.000000e+00> : vector<8x128xf32>
    %4 = tpu.matmul %2, %3, %cst {dimension_numbers = #tpu.dot_dimension_numbers<[1], [0], [0], [1], [0, 0, 1, 1], [], []>} : vector<8x24xbf16>, vector<24x128xbf16>, vector<8x128xf32> -> vector<8x128xf32>
    %5 = vector.extract_strided_slice %1 {offsets = [0, 0], sizes = [1, 128], strides = [1, 1]} : vector<8x128xf32> to vector<1x128xf32>
    %6 = vector.broadcast %5 : vector<1x128xf32> to vector<8x128xf32>
    %7 = arith.addf %4, %6 : vector<8x128xf32>
    %cst_5 = arith.constant 0.000000e+00 : f32
    %8 = vector.broadcast %cst_5 : f32 to vector<8x128xf32>
    %9 = arith.maximumf %7, %8 : vector<8x128xf32>
    %10 = arith.truncf %9 : vector<8x128xf32> to vector<8x128xbf16>
    %c0_6 = arith.constant 0 : index
    %c0_7 = arith.constant 0 : index
    %11 = vector.load %arg3[%c0_6, %c0_7] : memref<128x128xbf16, #tpu.memory_space<vmem>>, vector<128x128xbf16>
    %cst_8 = arith.constant dense<0.000000e+00> : vector<8x128xf32>
    %12 = tpu.matmul %10, %11, %cst_8 {dimension_numbers = #tpu.dot_dimension_numbers<[1], [0], [0], [1], [0, 0, 1, 1], [], []>} : vector<8x128xbf16>, vector<128x128xbf16>, vector<8x128xf32> -> vector<8x128xf32>
    %13 = vector.extract_strided_slice %1 {offsets = [1, 0], sizes = [1, 128], strides = [1, 1]} : vector<8x128xf32> to vector<1x128xf32>
    %14 = vector.broadcast %13 : vector<1x128xf32> to vector<8x128xf32>
    %15 = arith.addf %12, %14 : vector<8x128xf32>
    %cst_9 = arith.constant 0.000000e+00 : f32
    %16 = vector.broadcast %cst_9 : f32 to vector<8x128xf32>
    %17 = arith.maximumf %15, %16 : vector<8x128xf32>
    %18 = arith.truncf %17 : vector<8x128xf32> to vector<8x128xbf16>
    %c0_10 = arith.constant 0 : index
    %c0_11 = arith.constant 0 : index
    %19 = vector.load %arg4[%c0_10, %c0_11] : memref<128x128xbf16, #tpu.memory_space<vmem>>, vector<128x128xbf16>
    %cst_12 = arith.constant dense<0.000000e+00> : vector<8x128xf32>
    %20 = tpu.matmul %18, %19, %cst_12 {dimension_numbers = #tpu.dot_dimension_numbers<[1], [0], [0], [1], [0, 0, 1, 1], [], []>} : vector<8x128xbf16>, vector<128x128xbf16>, vector<8x128xf32> -> vector<8x128xf32>
    %21 = vector.extract_strided_slice %1 {offsets = [2, 0], sizes = [1, 128], strides = [1, 1]} : vector<8x128xf32> to vector<1x128xf32>
    %22 = vector.broadcast %21 : vector<1x128xf32> to vector<8x128xf32>
    %23 = arith.addf %20, %22 : vector<8x128xf32>
    %cst_13 = arith.constant 0.000000e+00 : f32
    %24 = vector.broadcast %cst_13 : f32 to vector<8x128xf32>
    %25 = arith.maximumf %23, %24 : vector<8x128xf32>
    %26 = arith.truncf %25 : vector<8x128xf32> to vector<8x128xbf16>
    %c0_14 = arith.constant 0 : index
    %c0_15 = arith.constant 0 : index
    %27 = vector.load %arg5[%c0_14, %c0_15] : memref<128x24xbf16, #tpu.memory_space<vmem>>, vector<128x24xbf16>
    %cst_16 = arith.constant dense<0.000000e+00> : vector<8x24xf32>
    %28 = tpu.matmul %26, %27, %cst_16 {dimension_numbers = #tpu.dot_dimension_numbers<[1], [0], [0], [1], [0, 0, 1, 1], [], []>} : vector<8x128xbf16>, vector<128x24xbf16>, vector<8x24xf32> -> vector<8x24xf32>
    %29 = vector.extract_strided_slice %1 {offsets = [3, 0], sizes = [1, 24], strides = [1, 1]} : vector<8x128xf32> to vector<1x24xf32>
    %30 = vector.broadcast %29 : vector<1x24xf32> to vector<8x24xf32>
    %31 = arith.addf %28, %30 : vector<8x24xf32>
    %cst_17 = arith.constant 0.000000e+00 : f32
    %32 = vector.broadcast %cst_17 : f32 to vector<8x24xf32>
    %33 = arith.maximumf %31, %32 : vector<8x24xf32>
    %34 = arith.minimumf %33, %0 : vector<8x24xf32>
    %c0_18 = arith.constant 0 : index
    %c0_19 = arith.constant 0 : index
    %35 = vector.load %arg7[%c0_18, %c0_19] : memref<8x24xf32, #tpu.memory_space<vmem>>, vector<8x24xf32>
    tpu.vector_store %arg7[%c0_18, %c0_19], %34 {strides = array<i32>} : memref<8x24xf32, #tpu.memory_space<vmem>>, vector<8x24xf32>,
    return
  }
  func.func @transform_0(%arg0: i32) -> (i32, i32) {
    %c0_i32 = arith.constant 0 : i32
    %c0_i32_0 = arith.constant 0 : i32
    return %arg0, %c0_i32 : i32, i32
  }
  func.func @transform_1(%arg0: i32) -> (i32, i32) {
    %c0_i32 = arith.constant 0 : i32
    %c0_i32_0 = arith.constant 0 : i32
    %c0_i32_1 = arith.constant 0 : i32
    return %c0_i32, %c0_i32_0 : i32, i32
  }
  func.func @transform_2(%arg0: i32) -> (i32, i32) {
    %c0_i32 = arith.constant 0 : i32
    %c0_i32_0 = arith.constant 0 : i32
    %c0_i32_1 = arith.constant 0 : i32
    return %c0_i32, %c0_i32_0 : i32, i32
  }
  func.func @transform_3(%arg0: i32) -> (i32, i32) {
    %c0_i32 = arith.constant 0 : i32
    %c0_i32_0 = arith.constant 0 : i32
    %c0_i32_1 = arith.constant 0 : i32
    return %c0_i32, %c0_i32_0 : i32, i32
  }
  func.func @transform_4(%arg0: i32) -> (i32, i32) {
    %c0_i32 = arith.constant 0 : i32
    %c0_i32_0 = arith.constant 0 : i32
    %c0_i32_1 = arith.constant 0 : i32
    return %c0_i32, %c0_i32_0 : i32, i32
  }
  func.func @transform_5(%arg0: i32) -> (i32, i32) {
    %c0_i32 = arith.constant 0 : i32
    %c0_i32_0 = arith.constant 0 : i32
    %c0_i32_1 = arith.constant 0 : i32
    return %c0_i32, %c0_i32_0 : i32, i32
  }
  func.func @transform_6(%arg0: i32) -> (i32, i32) {
    %c0_i32 = arith.constant 0 : i32
    %c0_i32_0 = arith.constant 0 : i32
    return %arg0, %c0_i32 : i32, i32
  }
}

</mosaic_0001>

<bundles_post_ra>
// kernel: tpu_custom_call.1
= control target key start
LH: loop header
LB: loop body
LE: loop exit
PB: predicated region body
PF: predicated region fallthrough
CT: control target
= control target key end

     0   :  { %11 = vsyncpa [#allocation3], 0  ;;  %s714_s0 = inlined_call_operand.hbm [shape: f32[8,24], index: 0, kind: input, shape index: {}]   ;;  %s715_s1 = inlined_call_operand.vmem [shape: bf16[24,128], index: 1, kind: input, shape index: {}]   ;;  %s716_s2 = inlined_call_operand.vmem [shape: bf16[128,128], index: 2, kind: input, shape index: {}]   ;;  %s717_s3 = inlined_call_operand.hbm [shape: bf16[128,128], index: 3, kind: input, shape index: {}]   ;;  %s718_s4 = inlined_call_operand.vmem [shape: bf16[128,24], index: 4, kind: input, shape index: {}]   ;;  %s719_s5 = inlined_call_operand.hbm [shape: f32[8,128], index: 5, kind: input, shape index: {}]   ;;  %s720_s6 = inlined_call_operand.hbm [shape: f32[8,24], index: 6, kind: output, shape index: {}]  }
   0x1   :  { %12 = vsyncpa [#allocation6], 0  ;;  %s33_s23 = sshll.u32 %s717_s3, 4  ;;  %s34_s23 = int_to_ptr.hbm [resolvable:$true] %s33_s23 }
   0x2   :  { %13 = vsyncpa [#allocation4], 0  ;;  %s600_s24 = smov [#allocation5]   ;;  %s19_s28 = sshll.u32 %s714_s0, 4  ;;  %s20_s28 = int_to_ptr.hbm [resolvable:$true] %s19_s28 }
   0x3   :  { %s35_s25 = sshll.u32 %s600_s24, 4  ;;  %s601_s29 = smov 64   ;;  %s36_s25 = int_to_ptr.vmem [resolvable:$true] %s35_s25 }
   0x4   :  { %s602_s30 = smov 4   ;;  %s603_s7 = smov [#allocation2]  }
   0x5   :  { %41 = dma.hbm_to_vmem [thread:$0]  %s34_s23, 1024, %s36_s25, [#allocation6], %s601_s29, %s601_s29, %s602_s30  }
   0x6   :  { %s21_s8 = sshll.u32 %s603_s7, 4  ;;  %s49_s11 = sshll.u32 %s719_s5, 4  ;;  %s22_s8 = int_to_ptr.vmem [resolvable:$true] %s21_s8  ;;  %s50_s11 = int_to_ptr.hbm [resolvable:$true] %s49_s11 }
   0x7   :  { %24 = dma.hbm_to_vmem [thread:$0]  %s20_s28, 128, %s22_s8, [#allocation3]  }
   0x8   :  { %s604_s3 = smov [#allocation7]  }
   0x9   :  { %s51_s12 = sshll.u32 %s604_s3, 4  ;;  %s52_s12 = int_to_ptr.vmem [resolvable:$true] %s51_s12 }
   0xa   :  { %54 = dma.hbm_to_vmem [thread:$0]  %s50_s11, 128, %s52_s12, [#allocation6]  }
   0xb   :  { %594 = dma.done.wait [#allocation3], 128  }
   0xc   :  { %595 = vsyncadd [#allocation3], 4294967168 }
   0xd   :  { %596 = dma.done.wait [#allocation6], 1152  }
   0xe   :  { %597 = vsyncadd [#allocation6], 4294966144  ;;  %v73_v0 = vld [vmem:[%s715_s1 + $0x8] sm:$0xf]  ;;  %v475_v2 = vld [vmem:[%s716_s2 + $0x38] sm:$0xff]  ;;  %vm88_vm0 = vcmask 1043456  }
   0xf   :  { %v80_v1 = vunpack.c.l.b16 %v73_v0  ;;  %172 = vmatpush.bf16.msra.mxu1 %v475_v2  ;;  %v474_v4 = vld [vmem:[%s716_s2 + $0x30] sm:$0xff]  ;;  %v467_v6 = vld [vmem:[%s715_s1] sm:$0xff]  ;;  %v473_v8 = vld [vmem:[%s716_s2 + $0x28] sm:$0xff]  ;;  %vm84_vm1 = vcmask 195584   ;;  %s605_s18 = smov [#allocation8]   ;;  %s355_s22 = sshll.u32 %s720_s6, 4  ;;  %s356_s22 = int_to_ptr.hbm [resolvable:$true] %s355_s22 }
  0x10   :  { %v662_v7 = vld [vmem:[#allocation2] sm:$0xff]  ;;  %v471_v11 = vld [vmem:[%s716_s2 + $0x18] sm:$0xff]  ;;  %v470_v12 = vld [vmem:[%s716_s2 + $0x10] sm:$0xff]  ;;  %s353_s19 = sshll.u32 %s605_s18, 4  ;;  %s354_s19 = int_to_ptr.vmem [resolvable:$true] %s353_s19 }
  0x11   :  { %v82_v3 = vpack.c.b16 %v80_v1, %v80_v1  ;;  %v70_v9 = vpack.c.bf16 %v662_v7, %v662_v7  ;;  %v472_v10 = vld [vmem:[%s716_s2 + $0x20] sm:$0xff]  ;;  %v469_v13 = vld [vmem:[%s716_s2 + $0x8] sm:$0xff]  ;;  %v482_v16 = vld [vmem:[#allocation5 + $0x30] sm:$0xff] }
  0x12   :  { %v468_v14 = vld [vmem:[%s716_s2] sm:$0xff]  ;;  %v481_v17 = vld [vmem:[#allocation5 + $0x28] sm:$0xff]  ;;  %v480_v18 = vld [vmem:[#allocation5 + $0x20] sm:$0xff] }
  0x13   :  { %v90_v5 = vsel %vm88_vm0, %v82_v3, 0  ;;  %173 = vmatpush.bf16.msra.mxu1 %v474_v4  ;;  %v483_v15 = vld [vmem:[#allocation5 + $0x38] sm:$0xff]  ;;  %v69_v20 = vld [vmem:[#allocation7] sm:$0xff]  ;;  %v478_v21 = vld [vmem:[#allocation5 + $0x10] sm:$0xff] }
  0x14   :  { %98 = vmatpush.bf16.msra.mxu0 %v90_v5  ;;  %252 = vmatpush.bf16.msra.mxu2 %v483_v15  ;;  %v479_v19 = vld [vmem:[#allocation5 + $0x18] sm:$0xff]  ;;  %v74_v22 = vperm.slane %v69_v20, 0  ;;  %v477_v28 = vld [vmem:[#allocation5 + $0x8] sm:$0xff]  ;;  %v476_v29 = vld [vmem:[#allocation5] sm:$0xff]  ;;  %v123_v36 = vperm.slane %v69_v20, 1  ;;  %v203_v44 = vperm.slane %v69_v20, 2 }
  0x15   :  { %v491_v30 = vld [vmem:[%s718_s4 + $0x38] sm:$0xff]  ;;  %v490_v31 = vld [vmem:[%s718_s4 + $0x30] sm:$0xff]  ;;  %v489_v32 = vld [vmem:[%s718_s4 + $0x28] sm:$0xff]  ;;  %v283_v50 = vperm.slane %v69_v20, 3 }
  0x16   :  { %332 = vmatpush.bf16.msra.mxu3 %v491_v30  ;;  %v488_v33 = vld [vmem:[%s718_s4 + $0x20] sm:$0xff]  ;;  %v487_v34 = vld [vmem:[%s718_s4 + $0x18] sm:$0xff]  ;;  %v486_v35 = vld [vmem:[%s718_s4 + $0x10] sm:$0xff] }
  0x17   :  { %174 = vmatpush.bf16.msra.mxu1 %v473_v8  ;;  %v485_v42 = vld [vmem:[%s718_s4 + $0x8] sm:$0xff]  ;;  %v484_v43 = vld [vmem:[%s718_s4] sm:$0xff] }
  0x18   :  { %99 = vmatpush.bf16.msra.mxu0 %v467_v6  ;;  %253 = vmatpush.bf16.msra.mxu2 %v482_v16 }
  0x1a   :  { %333 = vmatpush.bf16.msra.mxu3 %v490_v31 }
  0x1b   :  { %370 = vmatmul.msk.bf16.vlgmr.msra.gmra.mxu0 %vm84_vm1, %v70_v9  ;;  %175 = vmatpush.bf16.msra.mxu1 %v472_v10 }
  0x1c   :  { %254 = vmatpush.bf16.msra.mxu2 %v481_v17 }
  0x1e   :  { %334 = vmatpush.bf16.msra.mxu3 %v489_v32 }
  0x1f   :  { %176 = vmatpush.bf16.msra.mxu1 %v471_v11 }
  0x20   :  { %255 = vmatpush.bf16.msra.mxu2 %v480_v18 }
  0x22   :  { %335 = vmatpush.bf16.msra.mxu3 %v488_v33 }
  0x23   :  { %177 = vmatpush.bf16.msra.mxu1 %v470_v12 }
  0x24   :  { %256 = vmatpush.bf16.msra.mxu2 %v479_v19 }
  0x26   :  { %336 = vmatpush.bf16.msra.mxu3 %v487_v34 }
  0x27   :  { %178 = vmatpush.bf16.msra.mxu1 %v469_v13 }
  0x28   :  { %257 = vmatpush.bf16.msra.mxu2 %v478_v21 }
  0x2a   :  { %337 = vmatpush.bf16.msra.mxu3 %v486_v35 }
  0x2b   :  { %179 = vmatpush.bf16.msra.mxu1 %v468_v14 }
  0x2c   :  { %258 = vmatpush.bf16.msra.mxu2 %v477_v28 }
  0x2e   :  { %338 = vmatpush.bf16.msra.mxu3 %v485_v42 }
  0x30   :  { %259 = vmatpush.bf16.msra.mxu2 %v476_v29 }
  0x32   :  { %339 = vmatpush.bf16.msra.mxu3 %v484_v43 }
  0x98   :  { %v101_v23 = vpop.f32.mrf.mxu0 }
  0x99   :  { %v102_v24 = vadd.f32 %v101_v23, %v74_v22 }
  0x9b   :  { %v105_v25 = vmax.f32 %v102_v24, 0.0 }
  0x9d   :  { %v106_v26 = vpack.c.bf16 %v105_v25, %v105_v25 }
  0x9f   :  { %180 = vmatmul.bf16.vlgmr.msra.gmra.mxu1 %v106_v26 }
  0xa0   :  { %v103_v27 = vpop.f32.mrf.mxu0 }
 0x11c   :  { %v181_v37 = vpop.f32.mrf.mxu1 }
 0x11d   :  { %v182_v38 = vadd.f32 %v181_v37, %v123_v36 }
 0x11f   :  { %v185_v39 = vmax.f32 %v182_v38, 0.0 }
 0x121   :  { %v186_v40 = vpack.c.bf16 %v185_v39, %v185_v39 }
 0x123   :  { %260 = vmatmul.bf16.vlgmr.msra.gmra.mxu2 %v186_v40 }
 0x124   :  { %v183_v41 = vpop.f32.mrf.mxu1 }
 0x1a6   :  { %v261_v45 = vpop.f32.mrf.mxu2 }
 0x1a7   :  { %v262_v46 = vadd.f32 %v261_v45, %v203_v44 }
 0x1a9   :  { %v265_v47 = vmax.f32 %v262_v46, 0.0 }
 0x1ab   :  { %v266_v48 = vpack.c.bf16 %v265_v47, %v265_v47 }
 0x1ad   :  { %340 = vmatmul.bf16.vlgmr.msra.gmra.mxu3 %v266_v48 }
 0x1ae   :  { %v263_v49 = vpop.f32.mrf.mxu2 }
 0x230   :  { %v341_v51 = vpop.f32.mrf.mxu3 }
 0x231   :  { %v342_v52 = vadd.f32 %v341_v51, %v283_v50 }
 0x233   :  { %v345_v53 = vmax.f32 %v342_v52, 0.0 }
 0x235   :  { %v346_v54 = vmin.f32 %v345_v53, %v662_v7 }
 0x237   :  { %347 = vst.msk [vmem:[#allocation8] sm:$0xff] %vm84_vm1, %v346_v54 }
 0x238   :  { %v343_v55 = vpop.f32.mrf.mxu3  ;;  %358 = dma.vmem_to_hbm [thread:$0]  %s354_s19, 128, %s356_s22, [#allocation4]  }
 0x239   :  { %598 = dma.done.wait [#allocation4], 128  }
 0x23a   :  { %599 = vsyncadd [#allocation4], 4294967168 }
 0x23b   :  { %363 = vsyncpa [#allocation3], 1 }
 0x23c   :  { %364 = vsyncpa [#allocation6], 1 }
 0x23d   :  { %365 = vsyncpa [#allocation4], 1 }

</bundles_post_ra>
